<compile_context>
chip_gen: v7x
topology: tpu7x:2x2x1
jax: 0.10.0
libtpu: 0.0.40
codegen_flags: <defaults>
</compile_context>

<pallas_src>
import functools

import jax
import jax.numpy as jnp
from jax import lax
from jax.experimental import pallas as pl
from jax.experimental.pallas import tpu as pltpu

LANE = 128
SUB = 8                   # sublanes per vreg
CHUNK_ROWS = 512          # streaming sub-chunk: 512 x 128 x 4B = 256 KiB f32
SPLIT_ROWS = 64           # above this, force >= 2 grid blocks (v7x: 2 TCs)
VMEM_LIMIT = 48 << 20     # fits v7x 64 MiB physical; well under v5e/v6e 128 MiB


def _round_up(x, m):
    return ((x + m - 1) // m) * m


def _accumulate(pos, neg, row0, acc, *, margin, n_valid, ragged):
    """acc (8,128) f32 += per-sublane/lane partial sums of relu(neg+margin-pos)."""
    rows = pos.shape[0]
    contrib = jnp.maximum(
        neg.astype(jnp.float32) + jnp.float32(margin) - pos.astype(jnp.float32),
        jnp.float32(0.0))
    if ragged:
        # Mask every element whose global index is >= n.  This covers both the
        # small lane-alignment zero pad and rows where the last grid block
        # overruns the array (stale/garbage VMEM): masked lanes contribute 0,
        # and jnp.where selects, so NaN garbage in the dead branch is harmless.
        row_ids = lax.broadcasted_iota(jnp.int32, (rows, LANE), 0)
        lane_ids = lax.broadcasted_iota(jnp.int32, (rows, LANE), 1)
        gidx = (row0 + row_ids) * LANE + lane_ids
        contrib = jnp.where(gidx < n_valid, contrib, jnp.float32(0.0))
    # Stage 1: VPU-only adds across vreg-rows -> one (8, 128) partial.
    return acc + jnp.sum(contrib.reshape(rows // SUB, SUB, LANE), axis=0)


def _hinge_partial_kernel(pos_ref, neg_ref, out_ref, *, margin, tile_m, chunk,
                          num_chunks, n_valid, ragged):
    block_row0 = pl.program_id(0) * tile_m
    acc0 = jnp.zeros((SUB, LANE), jnp.float32)

    if num_chunks == 1:
        acc = _accumulate(pos_ref[...], neg_ref[...], block_row0, acc0,
                          margin=margin, n_valid=n_valid, ragged=ragged)
    else:
        # Streaming accumulation: live state is ~1 vreg, so the compiler never
        # materializes tile-sized f32 temporaries in VMEM internal scratch.
        def body(c, acc):
            r0 = pl.multiple_of(c * chunk, chunk)
            return _accumulate(pos_ref[pl.ds(r0, chunk), :],
                               neg_ref[pl.ds(r0, chunk), :],
                               block_row0 + r0, acc,
                               margin=margin, n_valid=n_valid, ragged=ragged)
        acc = lax.fori_loop(0, num_chunks, body, acc0,
                            unroll=min(4, num_chunks))

    # Stage 2: single cross-lane reduce per block; scalar partial to SMEM.
    out_ref[0, 0] = jnp.sum(acc)


def hinge_loss(positive_logits: jax.Array,
               negative_logits: jax.Array,
               margin: float = 1.0) -> jax.Array:
    assert positive_logits.shape == negative_logits.shape
    n = positive_logits.size
    assert n > 0

    pos = positive_logits.reshape(-1)
    neg = negative_logits.reshape(-1)

    # Lane-align only (pad to a multiple of 8*128 = 1024 elements).  In the
    # common case (n % 1024 == 0) this is a free reshape, NOT a full HBM
    # pad/copy pass.  Padded zeros are neutralized by the in-kernel mask.
    padded_n = _round_up(n, SUB * LANE)
    if padded_n != n:
        pad = padded_n - n
        pos = jnp.pad(pos, (0, pad))
        neg = jnp.pad(neg, (0, pad))
    rows = padded_n // LANE                       # multiple of 8

    # Tile sizing: dtype-aware (keep the per-step DMA around 4 MiB per input),
    # and guarantee >= 2 grid blocks for mid/large inputs so both v7x
    # TensorCores are fed via the "parallel" grid axis.
    itemsize = max(jnp.dtype(positive_logits.dtype).itemsize,
                   jnp.dtype(negative_logits.dtype).itemsize)
    if itemsize <= 2:
        max_tile = 16384
    elif itemsize <= 4:
        max_tile = 8192
    else:
        max_tile = 4096
    target = rows if rows <= SPLIT_ROWS else pl.cdiv(rows, 2)
    tile_m = min(max_tile, _round_up(target, SUB))
    if tile_m > CHUNK_ROWS:
        tile_m = _round_up(tile_m, CHUNK_ROWS)    # inner loop divides evenly
        chunk = CHUNK_ROWS
    else:
        chunk = tile_m
    num_chunks = tile_m // chunk
    num_blocks = pl.cdiv(rows, tile_m)
    ragged = (num_blocks * tile_m * LANE) != n    # any pad / block overrun?

    kernel = functools.partial(
        _hinge_partial_kernel, margin=float(margin), tile_m=tile_m,
        chunk=chunk, num_chunks=num_chunks, n_valid=n, ragged=ragged)

    partials = pl.pallas_call(
        kernel,
        out_shape=jax.ShapeDtypeStruct((num_blocks, 1), jnp.float32),
        grid=(num_blocks,),
        in_specs=[
            pl.BlockSpec((tile_m, LANE), lambda i: (i, 0)),
            pl.BlockSpec((tile_m, LANE), lambda i: (i, 0)),
        ],
        out_specs=pl.BlockSpec((1, 1), lambda i: (i, 0),
                               memory_space=pltpu.SMEM),
        compiler_params=pltpu.CompilerParams(
            dimension_semantics=("parallel",),
            vmem_limit_bytes=VMEM_LIMIT),
    )(pos.reshape(rows, LANE), neg.reshape(rows, LANE))

    # Tiny final reduce + mean normalization (divide by the ORIGINAL count).
    return jnp.sum(partials) / jnp.float32(n)


if __name__ == "__main__":
    key = jax.random.PRNGKey(0)
    k1, k2, k3, k4, k5, k6 = jax.random.split(key, 6)
    margin = 1.0

    ok = True

    # Test 1: small f32 logits, exact-tile case (batch=8, num_pairs=256).
    pos = jax.random.normal(k1, (8, 256), dtype=jnp.float32)
    neg = jax.random.normal(k2, (8, 256), dtype=jnp.float32)
    loss = jax.block_until_ready(hinge_loss(pos, neg, margin))
    ref = jnp.mean(jnp.clip(neg + margin - pos, 0.0))
    ok &= bool(jnp.allclose(loss, ref, rtol=1e-5, atol=1e-6))

    # Test 2: ragged size (not a multiple of 128) exercising lane-pad + mask.
    pos_r = jax.random.normal(k3, (3, 100), dtype=jnp.float32)
    neg_r = jax.random.normal(k4, (3, 100), dtype=jnp.float32)
    loss_r = jax.block_until_ready(hinge_loss(pos_r, neg_r, margin))
    ref_r = jnp.mean(jnp.clip(neg_r + margin - pos_r, 0.0))
    ok &= bool(jnp.allclose(loss_r, ref_r, rtol=1e-5, atol=1e-6))

    # Test 3: bf16 inputs, cast to f32 happens inside the kernel.
    pos_b = pos.astype(jnp.bfloat16)
    neg_b = neg.astype(jnp.bfloat16)
    loss_b = jax.block_until_ready(hinge_loss(pos_b, neg_b, margin))
    ref_b = jnp.mean(jnp.clip(neg_b.astype(jnp.float32) + margin
                              - pos_b.astype(jnp.float32), 0.0))
    ok &= bool(jnp.allclose(loss_b, ref_b, rtol=1e-5, atol=1e-6))

    # Test 4: larger ragged case exercising multi-block grid, the streaming
    # fori_loop chunking, block overrun of the array, and in-kernel masking.
    pos_l = jax.random.normal(k5, (256, 1030), dtype=jnp.float32)
    neg_l = jax.random.normal(k6, (256, 1030), dtype=jnp.float32)
    loss_l = jax.block_until_ready(hinge_loss(pos_l, neg_l, margin))
    ref_l = jnp.mean(jnp.clip(neg_l + margin - pos_l, 0.0))
    ok &= bool(jnp.allclose(loss_l, ref_l, rtol=1e-4, atol=1e-6))

    assert ok, (loss, ref, loss_r, ref_r, loss_b, ref_b, loss_l, ref_l)
    print("KERNEL_OK")
</pallas_src>

<mosaic_0001>
module attributes {stable_mosaic.version = 11 : i64} {
  func.func @_hinge_partial_kernel(%arg0: i32, %arg1: memref<16x128xf32, #tpu.memory_space<vmem>>, %arg2: memref<16x128xf32, #tpu.memory_space<vmem>>, %arg3: memref<1x1xf32, #tpu.memory_space<smem>>) attributes {dimension_semantics = [#tpu.dimension_semantics<parallel>], iteration_bounds = array<i64: 1>, scalar_prefetch = 0 : i64, scratch_operands = 0 : i64, tpu.core_type = #tpu.core_type<tc>, window_params = [{transform_indices = @transform_0, window_bounds = array<i64: 16, 128>}, {transform_indices = @transform_1, window_bounds = array<i64: 16, 128>}, {transform_indices = @transform_2, window_bounds = array<i64: 1, 1>}]} {
    %cst = arith.constant 0.000000e+00 : f32
    %0 = vector.broadcast %cst : f32 to vector<8x128xf32>
    %c0 = arith.constant 0 : index
    %c0_0 = arith.constant 0 : index
    %1 = vector.load %arg1[%c0, %c0_0] : memref<16x128xf32, #tpu.memory_space<vmem>>, vector<16x128xf32>
    %c0_1 = arith.constant 0 : index
    %c0_2 = arith.constant 0 : index
    %2 = vector.load %arg2[%c0_1, %c0_2] : memref<16x128xf32, #tpu.memory_space<vmem>>, vector<16x128xf32>
    %cst_3 = arith.constant 1.000000e+00 : f32
    %3 = vector.broadcast %cst_3 : f32 to vector<16x128xf32>
    %4 = arith.addf %2, %3 : vector<16x128xf32>
    %5 = arith.subf %4, %1 : vector<16x128xf32>
    %cst_4 = arith.constant 0.000000e+00 : f32
    %6 = vector.broadcast %cst_4 : f32 to vector<16x128xf32>
    %7 = arith.maximumf %5, %6 : vector<16x128xf32>
    %8 = vector.shape_cast %7 : vector<16x128xf32> to vector<2x8x128xf32>
    %cst_5 = arith.constant dense<0.000000e+00> : vector<8x128xf32>
    %9 = vector.multi_reduction <add>, %8, %cst_5 [0] : vector<2x8x128xf32> to vector<8x128xf32>
    %10 = arith.addf %0, %9 : vector<8x128xf32>
    %11 = vector.shape_cast %10 : vector<8x128xf32> to vector<1x8x128xf32>
    %cst_6 = arith.constant dense<0.000000e+00> : vector<1xf32>
    %12 = vector.multi_reduction <add>, %11, %cst_6 [1, 2] : vector<1x8x128xf32> to vector<1xf32>
    %13 = vector.shape_cast %12 : vector<1xf32> to vector<1x1x1xf32>
    %14 = vector.extract %13[0, 0, 0] : f32 from vector<1x1x1xf32>
    %c0_7 = arith.constant 0 : index
    %c0_8 = arith.constant 0 : index
    %15 = memref.load %arg3[%c0_7, %c0_8] : memref<1x1xf32, #tpu.memory_space<smem>>
    memref.store %14, %arg3[%c0_7, %c0_8] : memref<1x1xf32, #tpu.memory_space<smem>>
    return
  }
  func.func @transform_0(%arg0: i32) -> (i32, i32) {
    %c0_i32 = arith.constant 0 : i32
    %c0_i32_0 = arith.constant 0 : i32
    return %arg0, %c0_i32 : i32, i32
  }
  func.func @transform_1(%arg0: i32) -> (i32, i32) {
    %c0_i32 = arith.constant 0 : i32
    %c0_i32_0 = arith.constant 0 : i32
    return %arg0, %c0_i32 : i32, i32
  }
  func.func @transform_2(%arg0: i32) -> (i32, i32) {
    %c0_i32 = arith.constant 0 : i32
    %c0_i32_0 = arith.constant 0 : i32
    return %arg0, %c0_i32 : i32, i32
  }
}

</mosaic_0001>

<bundles_post_ra>
// kernel: tpu_custom_call.1
= control target key start
LH: loop header
LB: loop body
LE: loop exit
PB: predicated region body
PF: predicated region fallthrough
CT: control target
= control target key end

     0   :  { %7 = vsyncpa [#allocation3], 0  ;;  %s201_s0 = inlined_call_operand.hbm [shape: f32[16,128], index: 0, kind: input, shape index: {}]   ;;  %s202_s1 = inlined_call_operand.hbm [shape: f32[16,128], index: 1, kind: input, shape index: {}]   ;;  %s203_s2 = inlined_call_operand.hbm [shape: f32[1,1], index: 2, kind: output, shape index: {}]  }
   0x1   :  { %8 = vsyncpa [#allocation6], 0 }
   0x2   :  { %9 = vsyncpa [#allocation4], 0  ;;  %s145_s9 = smov [#allocation2]   ;;  %s85_s13 = scalar_lea.hbm %s201_s0, 256 }
   0x3   :  { %s15_s10 = sshll.u32 %s145_s9, 4  ;;  %p86_p0 = scmp.ne.s32.totalorder %s201_s0, %s85_s13  ;;  %s16_s10 = int_to_ptr.vmem [resolvable:$true] %s15_s10 }
   0x4   :  { %p89_p1 = scmp.lt.u32.totalorder %s85_s13, %s201_s0 }
   0x6   :  { %p91_p2 = pnand %p89_p1, %p86_p0 }
   0x8   :  { %94 = shalt.err (!%p91_p2)
}
   0x9   :  { %s95_s18 = scalar_lea.vmem %s16_s10, 256  ;;  %p100_p4 = scmp.lt.s32.totalorder %s16_s10, %s16_s10 }
   0xa   :  { %p96_p3 = scmp.ne.s32.totalorder %s16_s10, %s95_s18  ;;  %p101_p5 = scmp.lt.s32.totalorder %s95_s18, %s95_s18 }
   0xc   :  { %p102_p6 = por %p101_p5, %p100_p4 }
   0xe   :  { %p103_p7 = pnand %p102_p6, %p96_p3 }
  0x10   :  { %106 = shalt.err (!%p103_p7)
}
  0x11   :  { %s146_s19 = smov 128   ;;  %s147_s20 = smov 8  }
  0x12   :  { %21 = dma.hbm_to_vmem [thread:$0]  %s201_s0, 256, %s16_s10, [#allocation3], %s146_s19, %s146_s19, %s147_s20  }
  0x13   :  { %s148_s23 = smov [#allocation5]   ;;  %s107_s27 = scalar_lea.hbm %s202_s1, 256 }
  0x14   :  { %s27_s24 = sshll.u32 %s148_s23, 4  ;;  %p108_p8 = scmp.ne.s32.totalorder %s202_s1, %s107_s27  ;;  %s28_s24 = int_to_ptr.vmem [resolvable:$true] %s27_s24 }
  0x15   :  { %p111_p9 = scmp.lt.u32.totalorder %s107_s27, %s202_s1 }
  0x17   :  { %p113_p10 = pnand %p111_p9, %p108_p8 }
  0x19   :  { %116 = shalt.err (!%p113_p10)
}
  0x1a   :  { %s117_s4 = scalar_lea.vmem %s28_s24, 256  ;;  %p122_p12 = scmp.lt.s32.totalorder %s28_s24, %s28_s24 }
  0x1b   :  { %p118_p11 = scmp.ne.s32.totalorder %s28_s24, %s117_s4  ;;  %p123_p13 = scmp.lt.s32.totalorder %s117_s4, %s117_s4 }
  0x1d   :  { %p124_p0 = por %p123_p13, %p122_p12 }
  0x1f   :  { %p125_p1 = pnand %p124_p0, %p118_p11 }
  0x21   :  { %128 = shalt.err (!%p125_p1)
}
  0x22   :  { %33 = dma.hbm_to_vmem [thread:$0]  %s202_s1, 256, %s28_s24, [#allocation6], %s146_s19, %s146_s19, %s147_s20  }
  0x23   :  { %139 = dma.done.wait [#allocation3], 256  }
  0x24   :  { %140 = vsyncadd [#allocation3], 4294967040 }
  0x25   :  { %141 = dma.done.wait [#allocation6], 256  }
  0x26   :  { %142 = vsyncadd [#allocation6], 4294967040  ;;  %v40_v0 = vld [vmem:[#allocation2] sm:$0xff]  ;;  %v42_v1 = vld [vmem:[#allocation5] sm:$0xff]  ;;  %s129_s8 = scalar_lea.hbm %s203_s2, 16 }
  0x27   :  { %v41_v2 = vld [vmem:[#allocation2 + $0x8] sm:$0xff]  ;;  %v43_v3 = vld [vmem:[#allocation5 + $0x8] sm:$0xff]  ;;  %v44_v4 = vadd.f32 1.0, %v42_v1  ;;  %p130_p2 = scmp.ne.s32.totalorder %s203_s2, %s129_s8  ;;  %p133_p3 = scmp.lt.u32.totalorder %s129_s8, %s203_s2 }
  0x28   :  { %v45_v5 = vadd.f32 1.0, %v43_v3 }
  0x29   :  { %v46_v6 = vsub.f32 %v44_v4, %v40_v0  ;;  %p135_p4 = pnand %p133_p3, %p130_p2 }
  0x2a   :  { %v47_v7 = vsub.f32 %v45_v5, %v41_v2 }
  0x2b   :  { %v48_v8 = vmax.f32 %v46_v6, 0.0 }
  0x2c   :  { %v49_v9 = vmax.f32 %v47_v7, 0.0 }
  0x2e   :  { %v50_v10 = vadd.f32 %v49_v9, %v48_v8 }
  0x30   :  { %52 = vadd.xlane.f32.xlu0 %v50_v10 }
  0xbd   :  { %v53_v11 = vpop.xlane.xlu0 %52 }
  0xbe   :  { %v54_v12 = vrot.slane %v53_v11, 4 }
  0xc0   :  { %v55_v13 = vadd.f32 %v54_v12, %v53_v11 }
  0xc2   :  { %v56_v14 = vrot.slane %v55_v13, 2 }
  0xc4   :  { %v57_v15 = vadd.f32 %v56_v14, %v55_v13 }
  0xc6   :  { %v58_v16 = vrot.slane %v57_v15, 1 }
  0xc8   :  { %v59_v17 = vadd.f32 %v58_v16, %v57_v15 }
  0xca   :  { %78 = vpush %v59_v17 }
  0xfb   :  { %s79_s1 = spop %78 }
  0xfc   :  { %62 = sst [smem:[#allocation7]] %s79_s1 }
  0xfd   :  { %138 = shalt.err (!%p135_p4)
}
  0xfe   :  { %s149_s13 = smov [#allocation7]  }
  0xff   :  { %70 = dma.smem_to_hbm %s149_s13, 16, %s203_s2, [#allocation4]  }
 0x100   :  { %143 = dma.done.wait [#allocation4], 16  }
 0x101   :  { %144 = vsyncadd [#allocation4], 4294967280 }
 0x102   :  { %74 = sfence }
 0x103   :  { %75 = vsyncpa [#allocation3], 1 }
 0x104   :  { %76 = vsyncpa [#allocation6], 1 }
 0x105   :  { %77 = vsyncpa [#allocation4], 1 }

</bundles_post_ra>
